<compile_context>
chip_gen: v5e
topology: v5e:2x2
jax: 0.10.0
libtpu: 0.0.40
codegen_flags: <defaults>
</compile_context>

<pallas_src>
import functools

import jax
import jax.numpy as jnp
from jax import lax
from jax.experimental import pallas as pl
from jax.experimental.pallas import tpu as pltpu

SMOOTH = 1e-6
LANES = 128
ROW_ALIGN = 32                 # block rows multiple of 32: covers f32/bf16/i8/bool tiling
MAX_BLOCK_ROWS = 4096          # 4096 * 128 * 4B = 2 MiB per f32 input block
SMALL_N_ELEMS = ROW_ALIGN * LANES   # below one aligned slab -> plain jnp fast path
                                    # (raise to ~128K elements in production)
MAX_PARTIALS = 2               # leading grid axis size when >1 TensorCore per device
VMEM_LIMIT_BYTES = 32 * 1024 * 1024

# Semantics for the partial-split axis.  Plain "parallel" is the documented
# megacore sharding mechanism; if an xprof trace on v7x shows only one core
# active, switch this to pltpu.CORE_PARALLEL.
_PARTIAL_AXIS_SEMANTICS = "parallel"


def _detect_num_tensorcores() -> int:
    """Best-effort TensorCores-per-device count (v7x / megacore chips -> 2)."""
    try:
        info = pltpu.get_tpu_info()
        for attr in ("num_cores", "core_count", "num_tensorcores",
                     "tensorcores_per_chip", "num_cores_per_chip"):
            v = getattr(info, attr, None)
            if isinstance(v, int) and 1 <= v <= 8:
                return v
    except Exception:
        pass
    try:
        kind = jax.devices()[0].device_kind.lower()
        if "lite" in kind or "v5e" in kind or "v6e" in kind:
            return 1
        if any(tag in kind for tag in ("v4", "v5p", "7x", "v7")):
            return 2
    except Exception:
        pass
    return 1


_NUM_TC = _detect_num_tensorcores()


def _cdiv(a, b):
    return -(-a // b)


def _round_down(a, b):
    return (a // b) * b


def _dice_kernel(x_ref, t_ref, out_ref, *, steps, block_rows, valid_rows, need_mask):
    p = pl.program_id(0)
    s = pl.program_id(1)

    @pl.when(s == 0)
    def _():
        out_ref[...] = jnp.zeros_like(out_ref)

    x = x_ref[...].astype(jnp.float32)
    t = t_ref[...].astype(jnp.float32)

    if need_mask:
        # Zero rows past the end of the real data.  This covers both the
        # ragged last block and any duplicated (clamped) block from the
        # partial split.  A few VPU ops per tile; hidden under the input DMA.
        blk = p * steps + s                       # UNclamped global block index
        rid = blk * block_rows + lax.broadcasted_iota(
            jnp.int32, (block_rows, LANES), 0)
        keep = rid < valid_rows
        x = jnp.where(keep, x, 0.0)
        t = jnp.where(keep, t, 0.0)

    # Collapse the tile to one (8, 128) vreg-shaped partial per quantity with
    # pure vreg-aligned elementwise adds (no XLU); the tiny cross-lane
    # reduction + dice math run in the wrapper.
    g = block_rows // 8
    out_ref[0, 0, :, :] += (x * t).reshape(g, 8, LANES).sum(axis=0)   # intersection
    out_ref[0, 1, :, :] += (x + t).reshape(g, 8, LANES).sum(axis=0)   # union (fused)


@jax.jit
def dice_loss(inputs, targets):
    assert inputs.shape == targets.shape
    x = inputs.reshape(-1)            # keep native dtype; cast happens in-kernel
    t = targets.reshape(-1)
    n = x.shape[0]

    # ---- small-input fast path: pallas dispatch would dominate -------------
    if n <= SMALL_N_ELEMS:
        xf = x.astype(jnp.float32)
        tf = t.astype(jnp.float32)
        intersection = jnp.sum(xf * tf)
        union = jnp.sum(xf) + jnp.sum(tf)
        dice = (2.0 * intersection + SMOOTH) / (union + SMOOTH)
        return 1.0 - dice

    # ---- lane-dense 2-D view (no block-level padding) -----------------------
    # TODO(synk): when n % 128 != 0 a <=127-element jnp.pad (one extra HBM pass)
    # is still required to form the (rows, 128) view; all block-level padding
    # has been replaced by in-kernel masking.
    rem = n % LANES
    if rem:
        x = jnp.pad(x, (0, LANES - rem))
        t = jnp.pad(t, (0, LANES - rem))
    rows = x.shape[0] // LANES
    x2 = x.reshape(rows, LANES)
    t2 = t.reshape(rows, LANES)

    block_rows = min(MAX_BLOCK_ROWS, _round_down(rows, ROW_ALIGN))
    blocks = _cdiv(rows, block_rows)
    num_partials = MAX_PARTIALS if (_NUM_TC >= 2 and blocks >= MAX_PARTIALS) else 1
    steps = _cdiv(blocks, num_partials)
    iter_blocks = num_partials * steps
    need_mask = iter_blocks * block_rows != rows

    if iter_blocks > blocks:
        # Clamp so the duplicated trailing iteration never DMAs out of bounds;
        # its contribution is zeroed by the in-kernel row mask.
        def in_map(p, s):
            return (jnp.minimum(p * steps + s, blocks - 1), 0)
    else:
        def in_map(p, s):
            return (p * steps + s, 0)

    kernel = functools.partial(
        _dice_kernel,
        steps=steps, block_rows=block_rows, valid_rows=rows, need_mask=need_mask)

    cost = pl.CostEstimate(
        flops=4 * n,
        transcendentals=0,
        bytes_accessed=(x2.size * x2.dtype.itemsize
                        + t2.size * t2.dtype.itemsize
                        + num_partials * 2 * 8 * LANES * 4),
    )

    partials = pl.pallas_call(
        kernel,
        out_shape=jax.ShapeDtypeStruct((num_partials, 2, 8, LANES), jnp.float32),
        grid_spec=pltpu.PrefetchScalarGridSpec(
            num_scalar_prefetch=0,
            grid=(num_partials, steps),
            in_specs=[
                # If xprof shows exposed DMA at grid-step handoff, add
                # pipeline_mode=pl.Buffered(3) to these two specs.
                pl.BlockSpec((block_rows, LANES), in_map),
                pl.BlockSpec((block_rows, LANES), in_map),
            ],
            out_specs=pl.BlockSpec((1, 2, 8, LANES), lambda p, s: (p, 0, 0, 0)),
        ),
        compiler_params=pltpu.CompilerParams(
            dimension_semantics=(
                _PARTIAL_AXIS_SEMANTICS if num_partials > 1 else "arbitrary",
                "arbitrary",
            ),
            vmem_limit_bytes=VMEM_LIMIT_BYTES,
        ),
        cost_estimate=cost,
    )(x2, t2)

    intersection = jnp.sum(partials[:, 0])
    union = jnp.sum(partials[:, 1])
    dice = (2.0 * intersection + SMOOTH) / (union + SMOOTH)
    return 1.0 - dice


def dice_loss_ref(inputs, targets):
    inputs = inputs.astype(jnp.float32)
    targets = targets.astype(jnp.float32)
    intersection = jnp.sum(inputs * targets)
    union = jnp.sum(inputs) + jnp.sum(targets)
    dice = (2.0 * intersection + SMOOTH) / (union + SMOOTH)
    return 1.0 - dice


if __name__ == "__main__":
    key = jax.random.PRNGKey(0)
    k1, k2 = jax.random.split(key)

    def make(shape):
        probs = jax.nn.sigmoid(jax.random.normal(k1, shape, dtype=jnp.float32))
        tgts = (jax.random.uniform(k2, shape) > 0.5).astype(jnp.float32)
        return probs, tgts

    # Small segmentation-style input (batch=2, channels=4, spatial=32):
    # large enough to take the Pallas kernel path (single streaming block).
    xa, ta = make((2, 4, 32, 32))
    out = jax.block_until_ready(dice_loss(xa, ta))
    ref = dice_loss_ref(xa, ta)
    assert jnp.allclose(out, ref, rtol=1e-4, atol=1e-5), (out, ref)

    # Tiny input: exercises the jnp fast path.
    xb, tb = make((2, 4, 16, 16))
    out_b = jax.block_until_ready(dice_loss(xb, tb))
    ref_b = dice_loss_ref(xb, tb)
    assert jnp.allclose(out_b, ref_b, rtol=1e-4, atol=1e-5), (out_b, ref_b)

    # Multi-block streaming + ragged last block (+ partial split on 2-TC chips).
    xc, tc = make((1, 3, 731, 640))
    out_c = jax.block_until_ready(dice_loss(xc, tc))
    ref_c = dice_loss_ref(xc, tc)
    assert jnp.allclose(out_c, ref_c, rtol=1e-4, atol=1e-5), (out_c, ref_c)

    # n not a multiple of 128: small pad fallback + masked ragged block.
    xd, td = make((1, 1, 100, 77))
    out_d = jax.block_until_ready(dice_loss(xd, td))
    ref_d = dice_loss_ref(xd, td)
    assert jnp.allclose(out_d, ref_d, rtol=1e-4, atol=1e-5), (out_d, ref_d)

    print("KERNEL_OK")
</pallas_src>

<mosaic_0001>
module attributes {stable_mosaic.version = 11 : i64} {
  func.func @_dice_kernel(%arg0: i32, %arg1: i32, %arg2: memref<64x128xf32, #tpu.memory_space<vmem>>, %arg3: memref<64x128xf32, #tpu.memory_space<vmem>>, %arg4: memref<1x2x8x128xf32, #tpu.memory_space<vmem>>) attributes {dimension_semantics = [#tpu.dimension_semantics<arbitrary>, #tpu.dimension_semantics<arbitrary>], iteration_bounds = array<i64: 1, 1>, scalar_prefetch = 0 : i64, scratch_operands = 0 : i64, tpu.core_type = #tpu.core_type<tc>, window_params = [{transform_indices = @transform_0, window_bounds = array<i64: 64, 128>}, {transform_indices = @transform_1, window_bounds = array<i64: 64, 128>}, {transform_indices = @transform_2, window_bounds = array<i64: 1, 2, 8, 128>}]} {
    %c0_i32 = arith.constant 0 : i32
    %0 = arith.cmpi eq, %arg1, %c0_i32 : i32
    %1 = arith.extui %0 : i1 to i32
    %c0_i32_0 = arith.constant 0 : i32
    %2 = arith.cmpi ne, %1, %c0_i32_0 : i32
    scf.if %2 {
      %cst_20 = arith.constant 0.000000e+00 : f32
      %23 = vector.broadcast %cst_20 : f32 to vector<1x2x8x128xf32>
      %c0_21 = arith.constant 0 : index
      %c0_22 = arith.constant 0 : index
      %c0_23 = arith.constant 0 : index
      %c0_24 = arith.constant 0 : index
      %24 = vector.load %arg4[%c0_21, %c0_22, %c0_23, %c0_24] : memref<1x2x8x128xf32, #tpu.memory_space<vmem>>, vector<1x2x8x128xf32>
      tpu.vector_store %arg4[%c0_21, %c0_22, %c0_23, %c0_24], %23 {strides = array<i32>} : memref<1x2x8x128xf32, #tpu.memory_space<vmem>>, vector<1x2x8x128xf32>,
    } else {
    }
    %c0 = arith.constant 0 : index
    %c0_1 = arith.constant 0 : index
    %3 = vector.load %arg2[%c0, %c0_1] : memref<64x128xf32, #tpu.memory_space<vmem>>, vector<64x128xf32>
    %c0_2 = arith.constant 0 : index
    %c0_3 = arith.constant 0 : index
    %4 = vector.load %arg3[%c0_2, %c0_3] : memref<64x128xf32, #tpu.memory_space<vmem>>, vector<64x128xf32>
    %c0_4 = arith.constant 0 : index
    %c0_5 = arith.constant 0 : index
    %c0_6 = arith.constant 0 : index
    %c0_7 = arith.constant 0 : index
    %5 = vector.load %arg4[%c0_4, %c0_5, %c0_6, %c0_7] : memref<1x2x8x128xf32, #tpu.memory_space<vmem>>, vector<1x1x8x128xf32>
    %6 = vector.shape_cast %5 : vector<1x1x8x128xf32> to vector<8x128xf32>
    %7 = arith.mulf %3, %4 : vector<64x128xf32>
    %8 = vector.shape_cast %7 : vector<64x128xf32> to vector<8x8x128xf32>
    %cst = arith.constant dense<0.000000e+00> : vector<8x128xf32>
    %9 = vector.multi_reduction <add>, %8, %cst [0] : vector<8x8x128xf32> to vector<8x128xf32>
    %10 = arith.addf %6, %9 : vector<8x128xf32>
    %c0_8 = arith.constant 0 : index
    %c0_9 = arith.constant 0 : index
    %c0_10 = arith.constant 0 : index
    %c0_11 = arith.constant 0 : index
    %11 = vector.load %arg4[%c0_8, %c0_9, %c0_10, %c0_11] : memref<1x2x8x128xf32, #tpu.memory_space<vmem>>, vector<1x1x8x128xf32>
    %12 = vector.shape_cast %11 : vector<1x1x8x128xf32> to vector<8x128xf32>
    %13 = vector.shape_cast %10 : vector<8x128xf32> to vector<1x1x8x128xf32>
    tpu.vector_store %arg4[%c0_8, %c0_9, %c0_10, %c0_11], %13 {strides = array<i32>} : memref<1x2x8x128xf32, #tpu.memory_space<vmem>>, vector<1x1x8x128xf32>,
    %c0_12 = arith.constant 0 : index
    %c1 = arith.constant 1 : index
    %c0_13 = arith.constant 0 : index
    %c0_14 = arith.constant 0 : index
    %14 = vector.load %arg4[%c0_12, %c1, %c0_13, %c0_14] : memref<1x2x8x128xf32, #tpu.memory_space<vmem>>, vector<1x1x8x128xf32>
    %15 = vector.shape_cast %14 : vector<1x1x8x128xf32> to vector<8x128xf32>
    %16 = arith.addf %3, %4 : vector<64x128xf32>
    %17 = vector.shape_cast %16 : vector<64x128xf32> to vector<8x8x128xf32>
    %cst_15 = arith.constant dense<0.000000e+00> : vector<8x128xf32>
    %18 = vector.multi_reduction <add>, %17, %cst_15 [0] : vector<8x8x128xf32> to vector<8x128xf32>
    %19 = arith.addf %15, %18 : vector<8x128xf32>
    %c0_16 = arith.constant 0 : index
    %c1_17 = arith.constant 1 : index
    %c0_18 = arith.constant 0 : index
    %c0_19 = arith.constant 0 : index
    %20 = vector.load %arg4[%c0_16, %c1_17, %c0_18, %c0_19] : memref<1x2x8x128xf32, #tpu.memory_space<vmem>>, vector<1x1x8x128xf32>
    %21 = vector.shape_cast %20 : vector<1x1x8x128xf32> to vector<8x128xf32>
    %22 = vector.shape_cast %19 : vector<8x128xf32> to vector<1x1x8x128xf32>
    tpu.vector_store %arg4[%c0_16, %c1_17, %c0_18, %c0_19], %22 {strides = array<i32>} : memref<1x2x8x128xf32, #tpu.memory_space<vmem>>, vector<1x1x8x128xf32>,
    return
  }
  func.func @transform_0(%arg0: i32, %arg1: i32) -> (i32, i32) {
    %c1_i32 = arith.constant 1 : i32
    %0 = arith.muli %arg0, %c1_i32 : i32
    %1 = arith.addi %0, %arg1 : i32
    %c0_i32 = arith.constant 0 : i32
    %c0_i32_0 = arith.constant 0 : i32
    return %1, %c0_i32 : i32, i32
  }
  func.func @transform_1(%arg0: i32, %arg1: i32) -> (i32, i32) {
    %c1_i32 = arith.constant 1 : i32
    %0 = arith.muli %arg0, %c1_i32 : i32
    %1 = arith.addi %0, %arg1 : i32
    %c0_i32 = arith.constant 0 : i32
    %c0_i32_0 = arith.constant 0 : i32
    return %1, %c0_i32 : i32, i32
  }
  func.func @transform_2(%arg0: i32, %arg1: i32) -> (i32, i32, i32, i32) {
    %c0_i32 = arith.constant 0 : i32
    %c0_i32_0 = arith.constant 0 : i32
    %c0_i32_1 = arith.constant 0 : i32
    %c0_i32_2 = arith.constant 0 : i32
    return %arg0, %c0_i32, %c0_i32_0, %c0_i32_1 : i32, i32, i32, i32
  }
}

</mosaic_0001>

<bundles_post_ra>
// kernel: dice_loss.1
= control target key start
LH: loop header
LB: loop body
LE: loop exit
PB: predicated region body
PF: predicated region fallthrough
CT: control target
= control target key end

     0   :  { %s202_s0 = inlined_call_operand.vmem [shape: f32[64,128], index: 0, kind: input, shape index: {}]   ;;  %s203_s1 = inlined_call_operand.vmem [shape: f32[64,128], index: 1, kind: input, shape index: {}]   ;;  %s204_s2 = inlined_call_operand.vmem [shape: f32[1,2,8,128], index: 2, kind: output, shape index: {}]  }
   0x1   :  { %v61_v0 = vld [vmem:[%s202_s0] sm:$0xff]  ;;  %v62_v1 = vld [vmem:[%s202_s0 + $0x8] sm:$0xff]  ;;  %v63_v2 = vld [vmem:[%s202_s0 + $0x10] sm:$0xff] }
   0x2   :  { %v64_v3 = vld [vmem:[%s202_s0 + $0x18] sm:$0xff]  ;;  %v69_v4 = vld [vmem:[%s203_s1] sm:$0xff]  ;;  %v70_v5 = vld [vmem:[%s203_s1 + $0x8] sm:$0xff] }
   0x3   :  { %v71_v6 = vld [vmem:[%s203_s1 + $0x10] sm:$0xff]  ;;  %v72_v7 = vld [vmem:[%s203_s1 + $0x18] sm:$0xff]  ;;  %v78_v8 = vmul.f32 %v69_v4, %v61_v0  ;;  %v97_v9 = vadd.f32 %v69_v4, %v61_v0  ;;  %v79_v10 = vmul.f32 %v70_v5, %v62_v1  ;;  %v98_v12 = vadd.f32 %v70_v5, %v62_v1  ;;  %v65_v13 = vld [vmem:[%s202_s0 + $0x20] sm:$0xff] }
   0x4   :  { %v80_v11 = vmul.f32 %v71_v6, %v63_v2  ;;  %v73_v14 = vld [vmem:[%s203_s1 + $0x20] sm:$0xff]  ;;  %v99_v15 = vadd.f32 %v71_v6, %v63_v2  ;;  %v81_v16 = vmul.f32 %v72_v7, %v64_v3  ;;  %v66_v18 = vld [vmem:[%s202_s0 + $0x28] sm:$0xff]  ;;  %v100_v20 = vadd.f32 %v72_v7, %v64_v3  ;;  %v67_v24 = vld [vmem:[%s202_s0 + $0x30] sm:$0xff] }
   0x5   :  { %v86_v17 = vadd.f32 %v79_v10, %v78_v8  ;;  %v74_v19 = vld [vmem:[%s203_s1 + $0x28] sm:$0xff]  ;;  %v105_v21 = vadd.f32 %v98_v12, %v97_v9  ;;  %v82_v22 = vmul.f32 %v73_v14, %v65_v13  ;;  %v75_v25 = vld [vmem:[%s203_s1 + $0x30] sm:$0xff]  ;;  %v101_v26 = vadd.f32 %v73_v14, %v65_v13  ;;  %v68_v30 = vld [vmem:[%s202_s0 + $0x38] sm:$0xff] }
   0x6   :  { %v83_v28 = vmul.f32 %v74_v19, %v66_v18  ;;  %v76_v31 = vld [vmem:[%s203_s1 + $0x38] sm:$0xff]  ;;  %v102_v32 = vadd.f32 %v74_v19, %v66_v18  ;;  %v84_v34 = vmul.f32 %v75_v25, %v67_v24  ;;  %v103_v36 = vadd.f32 %v75_v25, %v67_v24 }
   0x7   :  { %v87_v23 = vadd.f32 %v86_v17, %v80_v11  ;;  %v106_v27 = vadd.f32 %v105_v21, %v99_v15  ;;  %v85_v38 = vmul.f32 %v76_v31, %v68_v30  ;;  %v104_v40 = vadd.f32 %v76_v31, %v68_v30 }
   0x9   :  { %v88_v29 = vadd.f32 %v87_v23, %v81_v16  ;;  %v107_v33 = vadd.f32 %v106_v27, %v100_v20 }
   0xb   :  { %v89_v35 = vadd.f32 %v88_v29, %v82_v22  ;;  %v108_v37 = vadd.f32 %v107_v33, %v101_v26 }
   0xd   :  { %v90_v39 = vadd.f32 %v89_v35, %v83_v28  ;;  %v109_v41 = vadd.f32 %v108_v37, %v102_v32 }
   0xf   :  { %v91_v42 = vadd.f32 %v90_v39, %v84_v34  ;;  %v110_v43 = vadd.f32 %v109_v41, %v103_v36 }
  0x11   :  { %v92_v44 = vadd.f32 %v91_v42, %v85_v38  ;;  %v111_v45 = vadd.f32 %v110_v43, %v104_v40 }
  0x13   :  { %94 = vst [vmem:[%s204_s2] sm:$0xff] %v92_v44 }
  0x14   :  { %131 = vst [vmem:[%s204_s2 + $0x8] sm:$0xff] %v111_v45 }

</bundles_post_ra>
